<compile_context>
chip_gen: v6e
topology: v6e:2x2x1
jax: 0.10.0
libtpu: 0.0.40
codegen_flags: <defaults>
</compile_context>

<pallas_src>
import functools

import jax
import jax.numpy as jnp
from jax.experimental import pallas as pl
from jax.experimental.pallas import tpu as pltpu

_LANE = 128
_MIB = 1024 * 1024


def _round_up(x, m):
    return (x + m - 1) // m * m


def _sublane_pack(itemsize):
    # Native sublane packing: f32 -> 8, bf16 -> 16, int8/fp8 -> 32.
    return {4: 8, 2: 16, 1: 32}.get(itemsize, 8)


# -----------------------------------------------------------------------------
# Kernels.  Input block is (TBC, TH, k*W): the k row-taps of every pooling
# window live side-by-side on the lane axis, so Stage 1 is pure static lane
# slices + VPU max.  Output block is (TBC, TH, Wo).
# -----------------------------------------------------------------------------
def _mp_kernel(x_ref, o_ref, *, k, w):
    """Primary kernel: column taps via (Wo, k) minor-dim reshape + max."""
    tbc, th, _ = x_ref.shape
    wo = w // k
    a = x_ref[:, :, 0:w]                              # row tap 0: (TBC, TH, W)
    for i in range(1, k):
        a = jnp.maximum(a, x_ref[:, :, i * w:(i + 1) * w])
    o_ref[...] = jnp.max(a.reshape(tbc, th, wo, k), axis=-1)


def _mp_kernel_xpose(x_ref, o_ref, s_ref, *, k, w):
    """Fallback kernel (identical numerics): column taps via one minor-dim
    transpose + native sublane-strided reads.  Only used if the minor-dim
    reshape in `_mp_kernel` does not lower on this Mosaic version."""
    tbc, th, _ = x_ref.shape
    wo = w // k
    a = x_ref[:, :, 0:w]
    for i in range(1, k):
        a = jnp.maximum(a, x_ref[:, :, i * w:(i + 1) * w])
    s_ref[...] = jnp.swapaxes(a, 1, 2)                # (TBC, W, TH), W on sublanes
    b = s_ref[:, pl.ds(0, wo, stride=k), :]
    for d in range(1, k):
        b = jnp.maximum(b, s_ref[:, pl.ds(d, wo, stride=k), :])
    o_ref[...] = jnp.swapaxes(b, 1, 2)                # (TBC, TH, Wo)


# -----------------------------------------------------------------------------
# Tile selection with physically padded VMEM accounting.
# -----------------------------------------------------------------------------
def _padded_footprint_bytes(tbc, th, k, w, itemsize):
    """2x input + 2x output (double-buffered) + 1x scratch, all (sublane, lane)
    padded as they will actually sit in VMEM."""
    sub = _sublane_pack(itemsize)
    wo = max(1, w // k)
    th_p = _round_up(th, sub)
    in_b = tbc * th_p * _round_up(k * w, _LANE) * itemsize
    out_b = tbc * th_p * _round_up(wo, _LANE) * itemsize
    scr_b = tbc * _round_up(w, sub) * _round_up(th, _LANE) * itemsize
    return 2 * in_b + 2 * out_b + scr_b


def _divisors_desc(n):
    return [d for d in range(n, 0, -1) if n % d == 0]


def _choose_tiles(bc, ho, k, w, itemsize, budget_bytes):
    """Pick (plane tile TBC, output-row tile TH).

    TH must be a multiple of the dtype's sublane pack (or the full Ho) to keep
    the block legal; among in-budget combos we prefer >=2 total grid steps
    (v7x megacore + pipelining), then the largest tile, then the tallest tile
    (longer contiguous HBM bursts per plane)."""
    sub = _sublane_pack(itemsize)
    th_opts = [d for d in _divisors_desc(ho) if d == ho or d % sub == 0]
    tbc_opts = _divisors_desc(bc)
    best, best_key = None, None
    for th in th_opts:
        for tbc in tbc_opts:
            if _padded_footprint_bytes(tbc, th, k, w, itemsize) > budget_bytes:
                continue
            steps = (bc // tbc) * (ho // th)
            key = (steps >= 2, tbc * th, th)
            if best_key is None or key > best_key:
                best, best_key = (tbc, th), key
    if best is None:                      # nothing fits the budget: smallest legal tile
        best = (1, th_opts[-1])
    return best


def _vmem_capacity_bytes():
    try:
        cap = getattr(pltpu.get_tpu_info(), "vmem_capacity_bytes", None)
        if cap:
            return int(cap)
    except Exception:
        pass
    return 64 * _MIB                      # v7x per-TensorCore VMEM: worst case


# -----------------------------------------------------------------------------
# Forward wrapper (== MP(k).forward on NCHW input).
# -----------------------------------------------------------------------------
def mp_forward(x_nchw, k=2):
    """Equivalent of MP(k).forward(x): nn.MaxPool2d(kernel_size=k, stride=k)."""
    b, c, h, w = x_nchw.shape
    ho, wo = h // k, w // k
    assert ho > 0 and wo > 0, "spatial dims must be >= kernel size"
    if h % k or w % k:                    # PyTorch floors (ceil_mode=False)
        x_nchw = x_nchw[:, :, : ho * k, : wo * k]
    h, w = ho * k, wo * k

    bc = b * c
    # Metadata-only on contiguous NCHW: fold each window's k row-taps into the
    # lane axis -> lane-dense input blocks, contiguous k*W-long DMA rows.
    x2 = x_nchw.reshape(bc, ho, k * w)

    itemsize = jnp.dtype(x_nchw.dtype).itemsize
    vmem_cap = _vmem_capacity_bytes()
    budget = min(vmem_cap // 4, 24 * _MIB)          # padded total-footprint target
    tbc, th = _choose_tiles(bc, ho, k, w, itemsize, budget)
    grid = (bc // tbc, ho // th)

    footprint = _padded_footprint_bytes(tbc, th, k, w, itemsize)
    vmem_limit = min(vmem_cap * 3 // 4, 96 * _MIB)  # ~48 MiB on v7x, 96 MiB on v5e/v6e
    vmem_limit = min(max(vmem_limit, footprint + 2 * _MIB), vmem_cap)

    out_shape = jax.ShapeDtypeStruct((bc, ho, wo), x_nchw.dtype)
    in_spec = pl.BlockSpec((tbc, th, k * w), lambda p, r: (p, r, 0))
    out_spec = pl.BlockSpec((tbc, th, wo), lambda p, r: (p, r, 0))
    cparams = pltpu.CompilerParams(
        dimension_semantics=("parallel", "parallel"),
        vmem_limit_bytes=int(vmem_limit),
    )
    cost = pl.CostEstimate(
        flops=(k * k - 1) * bc * ho * wo,
        transcendentals=0,
        bytes_accessed=(bc * ho * k * w + bc * ho * wo) * itemsize,
    )

    def run(kernel, scratch_shapes):
        return pl.pallas_call(
            kernel,
            out_shape=out_shape,
            grid_spec=pltpu.PrefetchScalarGridSpec(
                num_scalar_prefetch=0,
                grid=grid,
                in_specs=[in_spec],
                out_specs=out_spec,
                scratch_shapes=scratch_shapes,
            ),
            compiler_params=cparams,
            cost_estimate=cost,
        )(x2)

    try:
        out2 = run(functools.partial(_mp_kernel, k=k, w=w), ())
    except Exception:
        # Guard for Mosaic versions that reject the minor-dim reshape: use the
        # transpose + sublane-strided variant (identical numerics).
        out2 = run(
            functools.partial(_mp_kernel_xpose, k=k, w=w),
            [pltpu.VMEM((tbc, w, th), x_nchw.dtype)],
        )
    return out2.reshape(b, c, ho, wo)


def mp_reference(x_nchw, k=2):
    """Pure-JAX reference of nn.MaxPool2d(kernel_size=k, stride=k)."""
    b, c, h, w = x_nchw.shape
    ho, wo = h // k, w // k
    xr = x_nchw[:, :, : ho * k, : wo * k].reshape(b, c, ho, k, wo, k)
    return jnp.max(xr, axis=(3, 5))


if __name__ == "__main__":
    key = jax.random.PRNGKey(0)
    # MP has no learnable parameters (it is only nn.MaxPool2d(k, k)).
    x = jax.random.normal(key, (2, 4, 16, 16), dtype=jnp.float32)  # NCHW

    y = jax.block_until_ready(mp_forward(x, k=2))
    y_ref = mp_reference(x, k=2)

    assert y.shape == (2, 4, 8, 8), y.shape
    assert y.dtype == x.dtype
    assert jnp.array_equal(y, y_ref), "Pallas maxpool mismatch vs reference"

    print("KERNEL_OK")
</pallas_src>

<mosaic_0001>
module attributes {stable_mosaic.version = 11 : i64} {
  func.func @_mp_kernel(%arg0: i32, %arg1: i32, %arg2: memref<4x8x32xf32, #tpu.memory_space<vmem>>, %arg3: memref<4x8x8xf32, #tpu.memory_space<vmem>>) attributes {dimension_semantics = [#tpu.dimension_semantics<parallel>, #tpu.dimension_semantics<parallel>], iteration_bounds = array<i64: 2, 1>, scalar_prefetch = 0 : i64, scratch_operands = 0 : i64, tpu.core_type = #tpu.core_type<tc>, window_params = [{transform_indices = @transform_0, window_bounds = array<i64: 4, 8, 32>}, {transform_indices = @transform_1, window_bounds = array<i64: 4, 8, 8>}]} {
    %c0 = arith.constant 0 : index
    %c0_0 = arith.constant 0 : index
    %c0_1 = arith.constant 0 : index
    %0 = vector.load %arg2[%c0, %c0_0, %c0_1] : memref<4x8x32xf32, #tpu.memory_space<vmem>>, vector<4x8x16xf32>
    %c0_2 = arith.constant 0 : index
    %c0_3 = arith.constant 0 : index
    %c16 = arith.constant 16 : index
    %1 = vector.load %arg2[%c0_2, %c0_3, %c16] : memref<4x8x32xf32, #tpu.memory_space<vmem>>, vector<4x8x16xf32>
    %2 = arith.maximumf %0, %1 : vector<4x8x16xf32>
    %3 = vector.shape_cast %2 : vector<4x8x16xf32> to vector<4x8x8x2xf32>
    %cst = arith.constant dense<0xFF800000> : vector<4x8x8xf32>
    %4 = vector.multi_reduction <maximumf>, %3, %cst [3] : vector<4x8x8x2xf32> to vector<4x8x8xf32>
    %c0_4 = arith.constant 0 : index
    %c0_5 = arith.constant 0 : index
    %c0_6 = arith.constant 0 : index
    %5 = vector.load %arg3[%c0_4, %c0_5, %c0_6] : memref<4x8x8xf32, #tpu.memory_space<vmem>>, vector<4x8x8xf32>
    tpu.vector_store %arg3[%c0_4, %c0_5, %c0_6], %4 {strides = array<i32>} : memref<4x8x8xf32, #tpu.memory_space<vmem>>, vector<4x8x8xf32>,
    return
  }
  func.func @transform_0(%arg0: i32, %arg1: i32) -> (i32, i32, i32) {
    %c0_i32 = arith.constant 0 : i32
    %c0_i32_0 = arith.constant 0 : i32
    return %arg0, %arg1, %c0_i32 : i32, i32, i32
  }
  func.func @transform_1(%arg0: i32, %arg1: i32) -> (i32, i32, i32) {
    %c0_i32 = arith.constant 0 : i32
    %c0_i32_0 = arith.constant 0 : i32
    return %arg0, %arg1, %c0_i32 : i32, i32, i32
  }
}

module attributes {stable_mosaic.version = 11 : i64} {
  func.func @_mp_kernel_xpose(%arg0: i32, %arg1: i32, %arg2: memref<4x8x32xf32, #tpu.memory_space<vmem>>, %arg3: memref<4x8x8xf32, #tpu.memory_space<vmem>>, %arg4: memref<4x16x8xf32, #tpu.memory_space<vmem>>) attributes {dimension_semantics = [#tpu.dimension_semantics<parallel>, #tpu.dimension_semantics<parallel>], iteration_bounds = array<i64: 2, 1>, scalar_prefetch = 0 : i64, scratch_operands = 1 : i64, tpu.core_type = #tpu.core_type<tc>, window_params = [{transform_indices = @transform_0, window_bounds = array<i64: 4, 8, 32>}, {transform_indices = @transform_1, window_bounds = array<i64: 4, 8, 8>}]} {
    %c0 = arith.constant 0 : index
    %c0_0 = arith.constant 0 : index
    %c0_1 = arith.constant 0 : index
    %0 = vector.load %arg2[%c0, %c0_0, %c0_1] : memref<4x8x32xf32, #tpu.memory_space<vmem>>, vector<4x8x16xf32>
    %c0_2 = arith.constant 0 : index
    %c0_3 = arith.constant 0 : index
    %c16 = arith.constant 16 : index
    %1 = vector.load %arg2[%c0_2, %c0_3, %c16] : memref<4x8x32xf32, #tpu.memory_space<vmem>>, vector<4x8x16xf32>
    %2 = arith.maximumf %0, %1 : vector<4x8x16xf32>
    %3 = tpu.transpose %2, [0, 2, 1] : vector<4x8x16xf32> -> vector<4x16x8xf32>
    %c0_4 = arith.constant 0 : index
    %c0_5 = arith.constant 0 : index
    %c0_6 = arith.constant 0 : index
    %4 = vector.load %arg4[%c0_4, %c0_5, %c0_6] : memref<4x16x8xf32, #tpu.memory_space<vmem>>, vector<4x16x8xf32>
    tpu.vector_store %arg4[%c0_4, %c0_5, %c0_6], %3 {strides = array<i32>} : memref<4x16x8xf32, #tpu.memory_space<vmem>>, vector<4x16x8xf32>,
    %c0_7 = arith.constant 0 : index
    %c0_8 = arith.constant 0 : index
    %c0_9 = arith.constant 0 : index
    %5 = tpu.strided_load %arg4[%c0_7, %c0_8, %c0_9] {strides = array<i32: 1, 2, 1>} : memref<4x16x8xf32, #tpu.memory_space<vmem>>, vector<4x8x8xf32>
    %c0_10 = arith.constant 0 : index
    %c1 = arith.constant 1 : index
    %c0_11 = arith.constant 0 : index
    %6 = tpu.strided_load %arg4[%c0_10, %c1, %c0_11] {strides = array<i32: 1, 2, 1>} : memref<4x16x8xf32, #tpu.memory_space<vmem>>, vector<4x8x8xf32>
    %7 = arith.maximumf %5, %6 : vector<4x8x8xf32>
    %8 = tpu.transpose %7, [0, 2, 1] : vector<4x8x8xf32> -> vector<4x8x8xf32>
    %c0_12 = arith.constant 0 : index
    %c0_13 = arith.constant 0 : index
    %c0_14 = arith.constant 0 : index
    %9 = vector.load %arg3[%c0_12, %c0_13, %c0_14] : memref<4x8x8xf32, #tpu.memory_space<vmem>>, vector<4x8x8xf32>
    tpu.vector_store %arg3[%c0_12, %c0_13, %c0_14], %8 {strides = array<i32>} : memref<4x8x8xf32, #tpu.memory_space<vmem>>, vector<4x8x8xf32>,
    return
  }
  func.func @transform_0(%arg0: i32, %arg1: i32) -> (i32, i32, i32) {
    %c0_i32 = arith.constant 0 : i32
    %c0_i32_0 = arith.constant 0 : i32
    return %arg0, %arg1, %c0_i32 : i32, i32, i32
  }
  func.func @transform_1(%arg0: i32, %arg1: i32) -> (i32, i32, i32) {
    %c0_i32 = arith.constant 0 : i32
    %c0_i32_0 = arith.constant 0 : i32
    return %arg0, %arg1, %c0_i32 : i32, i32, i32
  }
}

</mosaic_0001>

<bundles_post_ra>
// kernel: tpu_custom_call.1
= control target key start
LH: loop header
LB: loop body
LE: loop exit
PB: predicated region body
PF: predicated region fallthrough
CT: control target
= control target key end

     0   :  { %6 = vsyncpa [#allocation3], 0  ;;  %s2063_s0 = inlined_call_operand.hbm [shape: f32[8,8,32], index: 0, kind: input, shape index: {}]   ;;  %s2064_s1 = inlined_call_operand.hbm [shape: f32[8,8,8], index: 1, kind: output, shape index: {}]  }
   0x1   :  { %8 = vsyncpa [#allocation3 + $0x1], 0 }
   0x2   :  { %9 = vsyncpa [#allocation4], 0 }
   0x3   :  { %11 = vsyncpa [#allocation4 + $0x1], 0  ;;  %s1442_s6 = smov 0   ;;  %s1444_s7 = smov 0  }
   0x4   :  { %s1446_s8 = smov 0   ;;  %s1448_s9 = smov 0  }
   0x5   :  { %s1450_s10 = smov 0   ;;  %s1452_s11 = smov 0  }
   0x6 LB: > { %s1213_s12 = sadd.s32 4294967295, %s1414_s11   ;;  %s1214_s13 = sadd.s32 4294967294, %s1414_s11   ;;  %s1414_s11 = sphi %s1452_s11, %s17_s11   ;;  %s1410_s10 = sphi %s1450_s10, %s2081_s10   ;;  %s1406_s9 = sphi %s1448_s9, %s2080_s9   ;;  %s1402_s8 = sphi %s1446_s8, %s2079_s8   ;;  %s1398_s7 = sphi %s1444_s7, %s2078_s7   ;;  %s1394_s6 = sphi %s1442_s6, %s2077_s6  }
   0x7   : > { %s29_s14 = sadd.s32 1, %s1410_s10  ;;  %s38_s15 = sadd.s32 1, %s1402_s8 }
   0x8   : > { %p31_p0 = scmp.ge.s32.totalorder %s29_s14, 2  ;;  %p45_p1 = scmp.ne.s32.totalorder %s1402_s8, %s1398_s7 }
   0x9   : > { %p46_p2 = scmp.eq.s32.totalorder %s1414_s11, 0  ;;  %p51_p3 = scmp.ne.s32.totalorder %s1398_s7, %s1394_s6 }
   0xa   : > { %s2083_s14 = smov (%p31_p0, %s29_s14), 0  ;;  %p52_p5 = scmp.eq.s32.totalorder %s1213_s12, 0 }
   0xb   : > { %p1483_p4 = por %p46_p2, %p45_p1  ;;  %s33_s17 = ssub.s32 %s1410_s10, %s2083_s14 }
   0xc   : > { %p77_p6 = scmp.eq.s32.totalorder %s1213_s12, 1  ;;  %p36_p7 = scmp.eq.s32.totalorder %s33_s17, 0 }
   0xd   : > { %p1489_p8 = por %p52_p5, %p51_p3  ;;  %p83_p10 = scmp.eq.s32.totalorder %s1214_s13, 1 }
   0xe   : > { %p1493_p9 = por %p77_p6, %p45_p1  ;;  %p1242_p13 = scmp.lt.s32.totalorder %s1414_s11, 2 }
   0xf   : > { %s1498_s20 = scalar_select %p36_p7, %s1402_s8, %s38_s15  }
  0x10   : > { %p1500_p11 = por %p83_p10, %p51_p3  ;;  %s103_s22 = sand.u32 1, %s1402_s8  }
  0x11   : > { %s1217_s23 = sshll.u32 %s103_s22, 5  ;;  %s1228_s24 = sshll.u32 %s1410_s10, 9 }
  0x12   : > { %s114_s27 = scalar_lea.hbm %s2063_s0, %s1228_s24  ;;  %s107_s28 = scalar_lea.vmem [#allocation2], %s1217_s23 }
  0x13   : > { %s115_s29 = sshll.u32 %s107_s28, 4  ;;  %p1513_p0 = pnand %p1242_p13, %p1483_p4  ;;  %s116_s29 = int_to_ptr.vmem [resolvable:$true] %s115_s29 }
  0x14   : > { %p1220_p1 = scmp.ge.s32.totalorder %s1414_s11, 1  ;;  %s104_s2 = scalar_lea.sflag [#allocation3], %s103_s22 }
  0x15   : > { %p1308_p2 = pneg %p1513_p0  ;;  %s1319_s3 = scalar_lea.vmem %s116_s29, 512 }
  0x16   : > { %p1320_p3 = scmp.ne.s32.totalorder %s116_s29, %s1319_s3  ;;  %s1416_s4 = smov [#allocation2]  }
  0x17   : > { %s1324_s5 = sshll.u32 %s1416_s4, 4  ;;  %s1325_s5 = int_to_ptr.vmem [resolvable:$false] %s1324_s5 }
  0x18   : > { %p1322_p5 = pnand %p1320_p3, %p1308_p2  ;;  %s1326_s12 = scalar_lea.vmem %s1325_s5, 1024 }
  0x19   : > { %p1327_p7 = scmp.lt.s32.totalorder %s116_s29, %s1325_s5  ;;  %p1328_p10 = scmp.lt.s32.totalorder %s1326_s12, %s1319_s3 }
  0x1a   : > { %p1323_p6 = pneg %p1322_p5 }
  0x1b   : > { %p1329_p12 = por %p1328_p10, %p1327_p7 }
  0x1d   : > { %p1330_p4 = pnand %p1329_p12, %p1323_p6 }
  0x1f   : > { %1333 = shalt.err (!%p1330_p4)
}
  0x20   : > { %s1417_s13 = smov 128   ;;  %s1418_s15 = smov 8  }
  0x21   : > { %1237 = dma.hbm_to_vmem [thread:$0]  (!%p1513_p0), %s114_s27, 512, %s116_s29, %s104_s2, %s1417_s13, %s1417_s13, %s1418_s15  }
  0x22   : > { %p123_p13 = scmp.lt.s32.totalorder %s1414_s11, 3 }
  0x24   : > { %p124_p2 = pnand %p1220_p1, %p123_p13 }
  0x25   : > { %s1526_s16 = sand.u32 (!%p124_p2), 1, %s1398_s7  }
  0x26   : > { %127 = sbr.rel (%p124_p2) target bundleno = 555 (0x22b), region = 24  ;;  %s1221_s17 = sshll.u32 (!%p124_p2), %s1526_s16, 5 }
  0x27   : > { %s130_s22 = scalar_lea.sflag (!%p124_p2), [#allocation3], %s1526_s16  ;;  %s133_s23 = scalar_lea.vmem (!%p124_p2), [#allocation2], %s1221_s17 }
  0x2b   : > { %1385 = dma.done.wait (%p1489_p8), %s130_s22, 512  }
  0x2c   : > { %1387 = vsyncadd (%p1489_p8), %s130_s22, 4294966784  ;;  %v154_v0 = vld [vmem:[%s133_s23] sm:$0xff]  ;;  %v156_v1 = vld [vmem:[%s133_s23 + $0x10] sm:$0xff]  ;;  %s1419_s24 = smov 112   ;;  %s1420_s25 = smov 126   ;;  %v2065_v17 = vlaneseq  ;;  %vm810_vm0 = vcmask 15360  }
  0x2d   : > { %162 = vrot.lane.b32.xlu0 %v154_v0, %s1419_s24  ;;  %166 = vrot.lane.b32.xlu1 %v156_v1, %s1419_s24  ;;  %v155_v2 = vld [vmem:[%s133_s23 + $0x8] sm:$0xff]  ;;  %v157_v3 = vld [vmem:[%s133_s23 + $0x18] sm:$0xff]  ;;  %s1421_s18 = smov 124   ;;  %s1422_s26 = smov 122   ;;  %v1427_v15 = vmov 1983009808  }
  0x2e   : > { %s1423_s27 = smov 120   ;;  %s1424_s28 = smov 118   ;;  %v269_v16 = vunpack.c.l.s4 %v1427_v15  ;;  %v1579_v21 = vshrl.u32 %v2065_v17, 7  ;;  %vm1069_vm1 = vcmask 1041409   ;;  %vm1071_vm2 = vcmask 1042434  }
  0x2f   : > { %s1425_s29 = smov 116   ;;  %s1426_s30 = smov 114   ;;  %vm1073_vm3 = vcmask 1043459   ;;  %vm1075_vm4 = vcmask 1044484   ;;  %vm1077_vm5 = vcmask 1045509   ;;  %vm1079_vm6 = vcmask 1046534  }
  0x30   : > { %v270_v20 = vunpack.c.0.s8 %v269_v16  ;;  %vm1081_vm7 = vcmask 1047559   ;;  %vm1108_vm8 = vcmask 64512   ;;  %s1963_s2 = scalar_lea.vmem [#allocation5], %s1221_s17  ;;  %s1229_s4 = sshll.u32 %s1406_s9, 9 }
  0x31   : > { %164 = vrot.lane.b32.xlu0 %v155_v2, %s1419_s24  ;;  %168 = vrot.lane.b32.xlu1 %v157_v3, %s1419_s24  ;;  %s1128_s3 = sshll.u32 %s1963_s2, 4  ;;  %s2011_s12 = scalar_lea.hbm %s2064_s1, %s1229_s4  ;;  %s2002_s3 = int_to_ptr.vmem [resolvable:$true] %s1128_s3 }
  0x32   : > { %v1586_v24 = vsub.s32 %v270_v20, %v1579_v21  ;;  %s1114_s13 = scalar_lea.sflag [#allocation4], %s1526_s16  ;;  %s1334_s15 = scalar_lea.vmem %s2002_s3, 512 }
  0x33   : > { %p1335_p8 = scmp.ne.s32.totalorder %s2002_s3, %s1334_s15  ;;  %s1429_s17 = smov [#allocation5]  }
  0x34   : > { %s1338_s22 = sshll.u32 %s1429_s17, 4  ;;  %s1339_s22 = int_to_ptr.vmem [resolvable:$false] %s1338_s22 }
  0x35   : > { %p1336_p12 = pnand %p1335_p8, %p1493_p9  ;;  %s1340_s23 = scalar_lea.vmem %s1339_s22, 1024 }
  0x36   : > { %p1341_p1 = scmp.lt.s32.totalorder %s2002_s3, %s1339_s22  ;;  %p1342_p3 = scmp.lt.s32.totalorder %s1340_s23, %s1334_s15 }
  0x37   : > { %p1337_p0 = pneg %p1336_p12 }
  0x38   : > { %p1343_p5 = por %p1342_p3, %p1341_p1 }
  0x3a   : > { %p1344_p6 = pnand %p1343_p5, %p1337_p0 }
  0x9f   : > { %v163_v4 = vpop.permute.xlu0 %162  ;;  %v167_v5 = vpop.permute.xlu1 %166 }
  0xa0   : > { %v1536_v6 = vmax.f32 %v154_v0, %v163_v4  ;;  %v1539_v7 = vmax.f32 %v156_v1, %v167_v5  ;;  %v1428_v0 = vmov 1934713408  }
  0xa1   : > { %v333_v1 = vunpack.c.l.s4 %v1428_v0 }
  0xa2   : > { %182 = vrot.lane.b32.xlu0 %v1536_v6, %s1420_s25 }
  0xa3   : > { %v165_v8 = vpop.permute.xlu0 %164  ;;  %v169_v9 = vpop.permute.xlu1 %168 }
  0xa4   : > { %v1541_v10 = vmax.f32 %v155_v2, %v165_v8  ;;  %v1545_v11 = vmax.f32 %v157_v3, %v169_v9  ;;  %v334_v8 = vunpack.c.0.s8 %v333_v1 }
  0xa6   : > { %186 = vrot.lane.b32.xlu0 %v1539_v7, %s1420_s25  ;;  %184 = vrot.lane.b32.xlu1 %v1541_v10, %s1420_s25 }
  0xaa   : > { %194 = vrot.lane.b32.xlu0 %v1536_v6, %s1421_s18  ;;  %188 = vrot.lane.b32.xlu1 %v1545_v11, %s1420_s25 }
  0xae   : > { %198 = vrot.lane.b32.xlu0 %v1539_v7, %s1421_s18  ;;  %196 = vrot.lane.b32.xlu1 %v1541_v10, %s1421_s18 }
  0xb2   : > { %206 = vrot.lane.b32.xlu0 %v1536_v6, %s1422_s26  ;;  %200 = vrot.lane.b32.xlu1 %v1545_v11, %s1421_s18 }
  0xb6   : > { %210 = vrot.lane.b32.xlu0 %v1539_v7, %s1422_s26  ;;  %208 = vrot.lane.b32.xlu1 %v1541_v10, %s1422_s26 }
  0xba   : > { %218 = vrot.lane.b32.xlu0 %v1536_v6, %s1423_s27  ;;  %212 = vrot.lane.b32.xlu1 %v1545_v11, %s1422_s26 }
  0xbe   : > { %222 = vrot.lane.b32.xlu0 %v1539_v7, %s1423_s27  ;;  %220 = vrot.lane.b32.xlu1 %v1541_v10, %s1423_s27 }
  0xc2   : > { %230 = vrot.lane.b32.xlu0 %v1536_v6, %s1424_s28  ;;  %224 = vrot.lane.b32.xlu1 %v1545_v11, %s1423_s27 }
  0xc6   : > { %234 = vrot.lane.b32.xlu0 %v1539_v7, %s1424_s28  ;;  %232 = vrot.lane.b32.xlu1 %v1541_v10, %s1424_s28 }
  0xca   : > { %242 = vrot.lane.b32.xlu0 %v1536_v6, %s1425_s29  ;;  %236 = vrot.lane.b32.xlu1 %v1545_v11, %s1424_s28 }
  0xce   : > { %246 = vrot.lane.b32.xlu0 %v1539_v7, %s1425_s29  ;;  %244 = vrot.lane.b32.xlu1 %v1541_v10, %s1425_s29 }
  0xd2   : > { %254 = vrot.lane.b32.xlu0 %v1536_v6, %s1426_s30  ;;  %248 = vrot.lane.b32.xlu1 %v1545_v11, %s1425_s29 }
  0xd6   : > { %258 = vrot.lane.b32.xlu0 %v1539_v7, %s1426_s30  ;;  %256 = vrot.lane.b32.xlu1 %v1541_v10, %s1426_s30 }
  0xda   : > { %260 = vrot.lane.b32.xlu1 %v1545_v11, %s1426_s30 }
 0x114   : > { %v183_v12 = vpop.permute.xlu0 %182 }
 0x118   : > { %v1572_v13 = vpop.permute.xlu1 %184  ;;  %v1574_v14 = vpop.permute.xlu0 %186 }
 0x11c   : > { %v1576_v18 = vpop.permute.xlu1 %188  ;;  %v195_v19 = vpop.permute.xlu0 %194 }
 0x11d   : > { %v267_v25 = vcombine.high %v1536_v6, %v195_v19  ;;  %v266_v2 = vcombine.low %v1536_v6, %v195_v19 }
 0x11f   : > { %v1592_v29 = vrot.slane %v267_v25, %v1586_v24  ;;  %v1670_v16 = vrot.slane %v266_v2, %v1586_v24 }
 0x120   : > { %v1581_v22 = vpop.permute.xlu1 %196  ;;  %v1583_v23 = vpop.permute.xlu0 %198 }
 0x121   : > { %v403_v31 = vcombine.high %v1541_v10, %v1581_v22  ;;  %v539_v34 = vcombine.high %v1539_v7, %v1583_v23  ;;  %v402_v19 = vcombine.low %v1541_v10, %v1581_v22  ;;  %v538_v25 = vcombine.low %v1539_v7, %v1583_v23 }
 0x123   : > { %v1608_v39 = vrot.slane %v403_v31, %v1586_v24  ;;  %v1621_v45 = vrot.slane %v539_v34, %v1586_v24 }
 0x124   : > { %v1589_v26 = vpop.permute.xlu1 %200  ;;  %v207_v27 = vpop.permute.xlu0 %206 }
 0x125   : > { %v283_v28 = vcombine.high %v183_v12, %v207_v27  ;;  %v675_v40 = vcombine.high %v1545_v11, %v1589_v26  ;;  %v282_v63 = vcombine.low %v183_v12, %v207_v27  ;;  %v674_v27 = vcombine.low %v1545_v11, %v1589_v26 }
 0x127   : > { %v1595_v30 = vrot.slane %v283_v28, %v1586_v24  ;;  %v1633_v51 = vrot.slane %v675_v40, %v1586_v24  ;;  %v1664_v5 = vrot.slane %v282_v63, %v1586_v24 }
 0x128   : > { %v209_v32 = vpop.permute.xlu1 %208  ;;  %v211_v33 = vpop.permute.xlu0 %210 }
 0x129   : > { %v346_v35 = vcombine.low %v1592_v29, %v1595_v30  ;;  %v419_v37 = vcombine.high %v1572_v13, %v209_v32  ;;  %v555_v38 = vcombine.high %v1574_v14, %v211_v33  ;;  %v418_v9 = vcombine.low %v1572_v13, %v209_v32 }
 0x12a   : > { %v554_v12 = vcombine.low %v1574_v14, %v211_v33  ;;  %v330_v28 = vcombine.low %v1670_v16, %v1664_v5  ;;  %v1688_v14 = vsub.s32 %v334_v8, %v1579_v21  ;;  %v1706_v33 = vrot.slane %v402_v19, %v1586_v24 }
 0x12b   : > { %v1613_v41 = vrot.slane %v419_v37, %v1586_v24  ;;  %v1616_v42 = vrot.slane %v555_v38, %v1586_v24  ;;  %v1691_v31 = vrot.slane %v418_v9, %v1586_v24  ;;  %v1714_v38 = vrot.slane %v674_v27, %v1586_v24 }
 0x12c   : > { %v213_v43 = vpop.permute.xlu1 %212  ;;  %v1618_v44 = vpop.permute.xlu0 %218  ;;  %v1697_v23 = vrot.slane %v554_v12, %v1586_v24 }
 0x12d   : > { %v691_v46 = vcombine.high %v1576_v18, %v213_v43  ;;  %v482_v47 = vcombine.low %v1608_v39, %v1613_v41  ;;  %v618_v49 = vcombine.low %v1621_v45, %v1616_v42  ;;  %v690_v10 = vcombine.low %v1576_v18, %v213_v43 }
 0x12e   : > { %v1709_v18 = vrot.slane %v538_v25, %v1586_v24  ;;  %v466_v63 = vcombine.low %v1706_v33, %v1691_v31 }
 0x12f   : > { %v1636_v52 = vrot.slane %v691_v46, %v1586_v24  ;;  %v338_v46 = vrot.slane %v330_v28, %v1688_v14  ;;  %v1724_v0 = vrot.slane %v690_v10, %v1586_v24 }
 0x130   : > { %v1638_v53 = vpop.permute.xlu1 %220  ;;  %v1640_v54 = vpop.permute.xlu0 %222  ;;  %v602_v8 = vcombine.low %v1709_v18, %v1697_v23 }
 0x131   : > { %v755_v56 = vcombine.high %v1633_v51, %v1636_v52 }
 0x134   : > { %v1646_v57 = vpop.permute.xlu1 %224  ;;  %v1648_v58 = vpop.permute.xlu0 %230 }
 0x138   : > { %v1650_v59 = vpop.permute.xlu1 %232  ;;  %v1652_v60 = vpop.permute.xlu0 %234 }
 0x13c   : > { %v1654_v61 = vpop.permute.xlu1 %236  ;;  %v1656_v62 = vpop.permute.xlu0 %242 }
 0x13d   : > { %v298_v15 = vcombine.low %v1618_v44, %v1656_v62 }
 0x13f   : > { %v306_v22 = vrot.slane %v298_v15, %v1586_v24 }
 0x140   : > { %v1659_v3 = vpop.permute.xlu1 %244  ;;  %v1661_v4 = vpop.permute.xlu0 %246 }
 0x141   : > { %v434_v11 = vcombine.low %v1638_v53, %v1659_v3  ;;  %v570_v34 = vcombine.low %v1640_v54, %v1661_v4 }
 0x143   : > { %v442_v9 = vrot.slane %v434_v11, %v1586_v24  ;;  %v578_v25 = vrot.slane %v570_v34, %v1586_v24  ;;  %v474_v11 = vrot.slane %v466_v63, %v1688_v14 }
 0x144   : > { %v1673_v20 = vpop.permute.xlu1 %248  ;;  %v1675_v6 = vpop.permute.xlu0 %254 }
 0x145   : > { %v314_v13 = vcombine.low %v1648_v58, %v1675_v6  ;;  %v706_v1 = vcombine.low %v1646_v57, %v1673_v20  ;;  %v707_v55 = vcombine.high %v1646_v57, %v1673_v20 }
 0x147   : > { %v322_v7 = vrot.slane %v314_v13, %v1586_v24  ;;  %v1739_v17 = vrot.slane %v706_v1, %v1586_v24 }
 0x148   : > { %v1701_v26 = vpop.permute.xlu1 %256  ;;  %v1703_v32 = vpop.permute.xlu0 %258 }
 0x149   : > { %v362_v37 = vcombine.low %v306_v22, %v322_v7  ;;  %v450_v40 = vcombine.low %v1650_v59, %v1701_v26  ;;  %v586_v43 = vcombine.low %v1652_v60, %v1703_v32 }
 0x14b   : > { %v370_v2 = vrot.slane %v362_v37, %v1688_v14  ;;  %v458_v15 = vrot.slane %v450_v40, %v1586_v24  ;;  %v594_v12 = vrot.slane %v586_v43, %v1586_v24  ;;  %v738_v37 = vcombine.low %v1714_v38, %v1724_v0 }
 0x14c   : > { %v261_v19 = vpop.permute.xlu1 %260  ;;  %v363_v40 = vcombine.high %v306_v22, %v322_v7  ;;  %v331_v22 = vcombine.high %v1670_v16, %v1664_v5  ;;  %v315_v16 = vcombine.high %v1648_v58, %v1675_v6 }
 0x14d   : > { %v722_v13 = vcombine.low %v1654_v61, %v261_v19  ;;  %v395_v27 = vcombine.high %v338_v46, %v370_v2  ;;  %v394_v28 = vcombine.low %v338_v46, %v370_v2  ;;  %v498_v10 = vcombine.low %v442_v9, %v458_v15 }
 0x14e   : > { %v634_v48 = vcombine.low %v578_v25, %v594_v12  ;;  %v610_v2 = vrot.slane %v602_v8, %v1688_v14  ;;  %v1784_v6 = vrot.slane %v315_v16, %v1586_v24 }
 0x14f   : > { %v1743_v43 = vrot.slane %v722_v13, %v1586_v24  ;;  %v814_v34 = vsel %vm810_vm0, %v395_v27, -inf  ;;  %v811_v50 = vsel %vm810_vm0, %v394_v28, -inf  ;;  %v506_v46 = vrot.slane %v498_v10, %v1688_v14 }
 0x150   : > { %815 = vmax.xlane.f32.xlu1 %v814_v34  ;;  %812 = vmax.xlane.f32.xlu0 %v811_v50  ;;  %v642_v1 = vrot.slane %v634_v48, %v1688_v14  ;;  %v723_v13 = vcombine.high %v1654_v61, %v261_v19  ;;  %v746_v27 = vrot.slane %v738_v37, %v1688_v14 }
 0x151   : > { %v770_v36 = vcombine.low %v1739_v17, %v1743_v43  ;;  %v530_v7 = vcombine.low %v474_v11, %v506_v46  ;;  %v377_v28 = vrot.slane %v363_v40, %v1688_v14  ;;  %v635_v10 = vcombine.high %v578_v25, %v594_v12 }
 0x152   : > { %v666_v63 = vcombine.low %v610_v2, %v642_v1  ;;  %v531_v34 = vcombine.high %v474_v11, %v506_v46  ;;  %v603_v61 = vcombine.high %v1709_v18, %v1697_v23  ;;  %v345_v12 = vrot.slane %v331_v22, %v1688_v14 }
 0x153   : > { %v778_v50 = vrot.slane %v770_v36, %v1688_v14  ;;  %v835_v8 = vsel %vm810_vm0, %v530_v7, -inf  ;;  %v299_v36 = vcombine.high %v1618_v44, %v1656_v62  ;;  %v499_v19 = vcombine.high %v442_v9, %v458_v15 }
 0x154   : > { %v859_v48 = vsel %vm810_vm0, %v666_v63, -inf  ;;  %836 = vmax.xlane.f32.xlu0 %v835_v8  ;;  %v1770_v25 = vrot.slane %v723_v13, %v1586_v24  ;;  %v838_v20 = vsel %vm810_vm0, %v531_v34, -inf  ;;  %v667_v37 = vcombine.high %v610_v2, %v642_v1 }
 0x155   : > { %860 = vmax.xlane.f32.xlu1 %v859_v48  ;;  %v802_v5 = vcombine.low %v746_v27, %v778_v50  ;;  %v396_v11 = vcombine.low %v345_v12, %v377_v28  ;;  %v649_v23 = vrot.slane %v635_v10, %v1688_v14  ;;  %v467_v44 = vcombine.high %v1706_v33, %v1691_v31 }
 0x156   : > { %v1778_v62 = vrot.slane %v707_v55, %v1586_v24  ;;  %v1781_v58 = vrot.slane %v299_v36, %v1586_v24  ;;  %v617_v18 = vrot.slane %v603_v61, %v1688_v14  ;;  %v587_v9 = vcombine.high %v1652_v60, %v1703_v32 }
 0x157   : > { %v883_v57 = vsel %vm810_vm0, %v802_v5, -inf  ;;  %v771_v15 = vcombine.high %v1739_v17, %v1743_v43  ;;  %v513_v31 = vrot.slane %v499_v19, %v1688_v14  ;;  %v862_v33 = vsel %vm810_vm0, %v667_v37, -inf }
 0x158   : > { %839 = vmax.xlane.f32.xlu0 %v838_v20  ;;  %v787_v55 = vcombine.high %v1778_v62, %v1770_v25  ;;  %v817_v40 = vsel %vm810_vm0, %v396_v11, -inf  ;;  %v803_v46 = vcombine.high %v746_v27, %v778_v50  ;;  %v668_v2 = vcombine.low %v617_v18, %v649_v23 }
 0x159   : > { %884 = vmax.xlane.f32.xlu1 %v883_v57  ;;  %v571_v1 = vcombine.high %v1640_v54, %v1661_v4  ;;  %v481_v60 = vrot.slane %v467_v44, %v1688_v14  ;;  %v739_v17 = vcombine.high %v1714_v38, %v1724_v0  ;;  %v378_v32 = vcombine.low %v1781_v58, %v1784_v6 }
 0x15a   : > { %v1807_v43 = vrot.slane %v755_v56, %v1688_v14  ;;  %v451_v22 = vcombine.high %v1650_v59, %v1701_v26  ;;  %v1812_v54 = vrot.slane %v587_v9, %v1586_v24  ;;  %v397_v7 = vcombine.high %v345_v12, %v377_v28 }
 0x15b   : > { %v532_v4 = vcombine.low %v481_v60, %v513_v31  ;;  %v886_v63 = vsel %vm810_vm0, %v803_v46, -inf  ;;  %v865_v38 = vsel %vm810_vm0, %v668_v2, -inf  ;;  %v785_v0 = vrot.slane %v771_v15, %v1688_v14 }
 0x15c   : > { %863 = vmax.xlane.f32.xlu0 %v862_v33  ;;  %v1818_v13 = vrot.slane %v787_v55, %v1688_v14  ;;  %v435_v56 = vcombine.high %v1638_v53, %v1659_v3  ;;  %v585_v27 = vrot.slane %v571_v1, %v1586_v24  ;;  %v753_v59 = vrot.slane %v739_v17, %v1688_v14 }
 0x15d   : > { %818 = vmax.xlane.f32.xlu1 %v817_v40  ;;  %v465_v50 = vrot.slane %v451_v22, %v1586_v24  ;;  %v669_v10 = vcombine.high %v617_v18, %v649_v23  ;;  %v386_v8 = vrot.slane %v378_v32, %v1688_v14  ;;  %v841_v48 = vsel %vm810_vm0, %v532_v4, -inf }
 0x15e   : > { %v809_v26 = vcombine.high %v1807_v43, %v1818_v13  ;;  %v650_v28 = vcombine.low %v585_v27, %v1812_v54  ;;  %v820_v53 = vsel %vm810_vm0, %v397_v7, -inf  ;;  %v804_v3 = vcombine.low %v753_v59, %v785_v0 }
 0x15f   : > { %v449_v5 = vrot.slane %v435_v56, %v1586_v24  ;;  %v354_v61 = vrot.slane %v346_v35, %v1688_v14  ;;  %v533_v16 = vcombine.high %v481_v60, %v513_v31  ;;  %v868_v19 = vsel %vm810_vm0, %v669_v10, -inf }
 0x160   : > { %887 = vmax.xlane.f32.xlu0 %v886_v63  ;;  %v1832_v34 = vsel %vm810_vm0, %v809_v26, -inf  ;;  %v889_v12 = vsel %vm810_vm0, %v804_v3, -inf  ;;  %v658_v20 = vrot.slane %v650_v28, %v1688_v14  ;;  %v626_v24 = vrot.slane %v618_v49, %v1688_v14 }
 0x161   : > { %866 = vmax.xlane.f32.xlu1 %v865_v38  ;;  %v514_v36 = vcombine.low %v449_v5, %v465_v50  ;;  %v398_v57 = vcombine.low %v354_v61, %v386_v8  ;;  %v786_v37 = vcombine.low %v1778_v62, %v1770_v25  ;;  %v844_v35 = vsel %vm810_vm0, %v533_v16, -inf }
 0x162   : > { %v805_v23 = vcombine.high %v753_v59, %v785_v0  ;;  %v670_v44 = vcombine.low %v626_v24, %v658_v20  ;;  %v490_v9 = vrot.slane %v482_v47, %v1688_v14  ;;  %v379_v49 = vcombine.high %v1781_v58, %v1784_v6 }
 0x163   : > { %v823_v11 = vsel %vm810_vm0, %v398_v57, -inf  ;;  %v522_v18 = vrot.slane %v514_v36, %v1688_v14  ;;  %v399_v15 = vcombine.high %v354_v61, %v386_v8  ;;  %v794_v31 = vrot.slane %v786_v37, %v1688_v14 }
 0x164   : > { %842 = vmax.xlane.f32.xlu0 %v841_v48  ;;  %v892_v25 = vsel %vm810_vm0, %v805_v23, -inf  ;;  %v871_v62 = vsel %vm810_vm0, %v670_v44, -inf  ;;  %v2071_v33 = vcombine.low %v1633_v51, %v1636_v52  ;;  %v651_v47 = vcombine.high %v585_v27, %v1812_v54 }
 0x165   : > { %821 = vmax.xlane.f32.xlu1 %v820_v53  ;;  %v534_v55 = vcombine.low %v490_v9, %v522_v18  ;;  %v393_v46 = vrot.slane %v379_v49, %v1688_v14  ;;  %v826_v6 = vsel %vm810_vm0, %v399_v15, -inf  ;;  %v671_v1 = vcombine.high %v626_v24, %v658_v20 }
 0x166   : > { %v762_v40 = vrot.slane %v2071_v33, %v1688_v14  ;;  %v2072_v60 = vcombine.high %v1592_v29, %v1595_v30  ;;  %v515_v32 = vcombine.high %v449_v5, %v465_v50  ;;  %v535_v51 = vcombine.high %v490_v9, %v522_v18 }
 0x167   : > { %v847_v58 = vsel %vm810_vm0, %v534_v55, -inf  ;;  %v874_v22 = vsel %vm810_vm0, %v671_v1, -inf  ;;  %v665_v4 = vrot.slane %v651_v47, %v1688_v14  ;;  %v2073_v7 = vcombine.high %v1621_v45, %v1616_v42 }
 0x168   : > { %890 = vmax.xlane.f32.xlu0 %v889_v12  ;;  %v806_v2 = vcombine.low %v762_v40, %v794_v31  ;;  %v361_v17 = vrot.slane %v2072_v60, %v1688_v14  ;;  %v807_v38 = vcombine.high %v762_v40, %v794_v31  ;;  %v850_v29 = vsel %vm810_vm0, %v535_v51, -inf }
 0x169   : > { %869 = vmax.xlane.f32.xlu1 %v868_v19  ;;  %v633_v63 = vrot.slane %v2073_v7, %v1688_v14  ;;  %v529_v56 = vrot.slane %v515_v32, %v1688_v14  ;;  %v2074_v27 = vcombine.high %v1608_v39, %v1613_v41  ;;  %v808_v8 = vcombine.low %v1807_v43, %v1818_v13 }
 0x16a   : > { %v895_v52 = vsel %vm810_vm0, %v806_v2, -inf  ;;  %v400_v54 = vcombine.low %v361_v17, %v393_v46  ;;  %v898_v26 = vsel %vm810_vm0, %v807_v38, -inf  ;;  %v401_v50 = vcombine.high %v361_v17, %v393_v46 }
 0x16b   : > { %v672_v0 = vcombine.low %v633_v63, %v665_v4  ;;  %v497_v59 = vrot.slane %v2074_v27, %v1688_v14  ;;  %v673_v48 = vcombine.high %v633_v63, %v665_v4  ;;  %v901_v39 = vsel %vm810_vm0, %v808_v8, -inf }
 0x16c   : > { %845 = vmax.xlane.f32.xlu0 %v844_v35  ;;  %v829_v30 = vsel %vm810_vm0, %v400_v54, -inf  ;;  %v832_v10 = vsel %vm810_vm0, %v401_v50, -inf  ;;  %v2075_v49 = vlaneseq }
 0x16d   : > { %824 = vmax.xlane.f32.xlu1 %v823_v11  ;;  %v877_v42 = vsel %vm810_vm0, %v672_v0, -inf  ;;  %v536_v45 = vcombine.low %v497_v59, %v529_v56  ;;  %v880_v41 = vsel %vm810_vm0, %v673_v48, -inf  ;;  %v537_v14 = vcombine.high %v497_v59, %v529_v56 }
 0x16e   : > { %v940_v15 = vand.u32 127, %v2075_v49 }
 0x16f   : > { %v853_v28 = vsel %vm810_vm0, %v536_v45, -inf  ;;  %v856_v53 = vsel %vm810_vm0, %v537_v14, -inf }
 0x170   : > { %893 = vmax.xlane.f32.xlu0 %v892_v25  ;;  %v1918_v55 = vsub.s32 %v940_v15, %v1579_v21 }
 0x171   : > { %872 = vmax.xlane.f32.xlu1 %v871_v62 }
 0x174   : > { %848 = vmax.xlane.f32.xlu0 %v847_v58 }
 0x175   : > { %827 = vmax.xlane.f32.xlu1 %v826_v6 }
 0x178   : > { %896 = vmax.xlane.f32.xlu0 %v895_v52 }
 0x179   : > { %875 = vmax.xlane.f32.xlu1 %v874_v22 }
 0x17c   : > { %851 = vmax.xlane.f32.xlu0 %v850_v29 }
 0x17d   : > { %830 = vmax.xlane.f32.xlu1 %v829_v30 }
 0x180   : > { %899 = vmax.xlane.f32.xlu0 %v898_v26 }
 0x181   : > { %878 = vmax.xlane.f32.xlu1 %v877_v42 }
 0x184   : > { %854 = vmax.xlane.f32.xlu0 %v853_v28 }
 0x185   : > { %833 = vmax.xlane.f32.xlu1 %v832_v10 }
 0x188   : > { %902 = vmax.xlane.f32.xlu0 %v901_v39 }
 0x189   : > { %881 = vmax.xlane.f32.xlu1 %v880_v41 }
 0x18c   : > { %857 = vmax.xlane.f32.xlu0 %v856_v53 }
 0x190   : > { %905 = vmax.xlane.f32.xlu0 %v1832_v34 }
 0x1d9   : > { %v816_v3 = vpop.xlane.xlu1 %815  ;;  %v813_v5 = vpop.xlane.xlu0 %812 }
 0x1da   : > { %v948_v40 = vrot.slane %v816_v3, %v1918_v55  ;;  %v944_v47 = vrot.slane %v813_v5, %v1918_v55 }
 0x1dc   : > { %v1070_v1 = vsel %vm1069_vm1, %v948_v40, %v944_v47 }
 0x1dd   : > { %v1896_v36 = vpop.xlane.xlu0 %836 }
 0x1de   : > { %v861_v61 = vpop.xlane.xlu1 %860  ;;  %v976_v7 = vrot.slane %v1896_v36, %v1918_v55 }
 0x1df   : > { %v1008_v22 = vrot.slane %v861_v61, %v1918_v55 }
 0x1e1   : > { %v1900_v13 = vpop.xlane.xlu0 %839 }
 0x1e2   : > { %v1898_v43 = vpop.xlane.xlu1 %884  ;;  %v980_v63 = vrot.slane %v1900_v13, %v1918_v55 }
 0x1e4   : > { %v1083_v39 = vsel %vm1069_vm1, %v980_v63, %v976_v7 }
 0x1e5   : > { %v864_v12 = vpop.xlane.xlu0 %863 }
 0x1e6   : > { %v819_v16 = vpop.xlane.xlu1 %818  ;;  %v1012_v60 = vrot.slane %v864_v12, %v1918_v55 }
 0x1e7   : > { %v952_v46 = vrot.slane %v819_v16, %v1918_v55 }
 0x1e8   : > { %v1090_v56 = vsel %vm1069_vm1, %v1012_v60, %v1008_v22 }
 0x1e9   : > { %v1902_v57 = vpop.xlane.xlu0 %887  ;;  %v1072_v32 = vsel %vm1071_vm2, %v952_v46, %v1070_v1 }
 0x1ea   : > { %v867_v19 = vpop.xlane.xlu1 %866  ;;  %v1044_v5 = vrot.slane %v1902_v57, %v1918_v55  ;;  %v1040_v57 = vrot.slane %v1898_v43, %v1918_v55 }
 0x1eb   : > { %v1016_v51 = vrot.slane %v867_v19, %v1918_v55 }
 0x1ed   : > { %v1904_v24 = vpop.xlane.xlu0 %842  ;;  %v1091_v42 = vsel %vm1071_vm2, %v1016_v51, %v1090_v56 }
 0x1ee   : > { %v822_v20 = vpop.xlane.xlu1 %821  ;;  %v984_v45 = vrot.slane %v1904_v24, %v1918_v55 }
 0x1ef   : > { %v956_v58 = vrot.slane %v822_v20, %v1918_v55 }
 0x1f0   : > { %v1084_v16 = vsel %vm1071_vm2, %v984_v45, %v1083_v39 }
 0x1f1   : > { %v1906_v35 = vpop.xlane.xlu0 %890  ;;  %v1074_v54 = vsel %vm1073_vm3, %v956_v58, %v1072_v32 }
 0x1f2   : > { %v870_v37 = vpop.xlane.xlu1 %869  ;;  %v1048_v12 = vrot.slane %v1906_v35, %v1918_v55 }
 0x1f3   : > { %v1020_v4 = vrot.slane %v870_v37, %v1918_v55 }
 0x1f5   : > { %v1908_v11 = vpop.xlane.xlu0 %845  ;;  %v1092_v10 = vsel %vm1073_vm3, %v1020_v4, %v1091_v42 }
 0x1f6   : > { %v825_v34 = vpop.xlane.xlu1 %824  ;;  %v988_v8 = vrot.slane %v1908_v11, %v1918_v55 }
 0x1f7   : > { %v960_v6 = vrot.slane %v825_v34, %v1918_v55 }
 0x1f8   : > { %v1085_v24 = vsel %vm1073_vm3, %v988_v8, %v1084_v16 }
 0x1f9   : > { %v1910_v44 = vpop.xlane.xlu0 %893  ;;  %v1076_v38 = vsel %vm1075_vm4, %v960_v6, %v1074_v54 }
 0x1fa   : > { %v873_v23 = vpop.xlane.xlu1 %872  ;;  %v1052_v37 = vrot.slane %v1910_v44, %v1918_v55 }
 0x1fb   : > { %v1024_v29 = vrot.slane %v873_v23, %v1918_v55 }
 0x1fd   : > { %v1912_v9 = vpop.xlane.xlu0 %848  ;;  %v1093_v41 = vsel %vm1075_vm4, %v1024_v29, %v1092_v10 }
 0x1fe   : > { %v828_v18 = vpop.xlane.xlu1 %827  ;;  %v992_v14 = vrot.slane %v1912_v9, %v1918_v55 }
 0x1ff   : > { %v964_v17 = vrot.slane %v828_v18, %v1918_v55  ;;  %v1097_v18 = vsel %vm1069_vm1, %v1044_v5, %v1040_v57 }
 0x200   : > { %v1086_v11 = vsel %vm1075_vm4, %v992_v14, %v1085_v24  ;;  %v1098_v49 = vsel %vm1071_vm2, %v1048_v12, %v1097_v18 }
 0x201   : > { %v1915_v62 = vpop.xlane.xlu0 %896  ;;  %v1078_v27 = vsel %vm1077_vm5, %v964_v17, %v1076_v38 }
 0x202   : > { %v876_v25 = vpop.xlane.xlu1 %875  ;;  %v1056_v35 = vrot.slane %v1915_v62, %v1918_v55  ;;  %v1099_v62 = vsel %vm1073_vm3, %v1052_v37, %v1098_v49 }
 0x203   : > { %v1028_v59 = vrot.slane %v876_v25, %v1918_v55 }
 0x205   : > { %v1920_v33 = vpop.xlane.xlu0 %851  ;;  %v1094_v61 = vsel %vm1077_vm5, %v1028_v59, %v1093_v41 }
 0x206   : > { %v831_v31 = vpop.xlane.xlu1 %830  ;;  %v996_v36 = vrot.slane %v1920_v33, %v1918_v55  ;;  %v1100_v33 = vsel %vm1075_vm4, %v1056_v35, %v1099_v62 }
 0x207   : > { %v968_v52 = vrot.slane %v831_v31, %v1918_v55 }
 0x208   : > { %v1087_v43 = vsel %vm1077_vm5, %v996_v36, %v1086_v11 }
 0x209   : > { %v1927_v2 = vpop.xlane.xlu0 %899  ;;  %v1080_v50 = vsel %vm1079_vm6, %v968_v52, %v1078_v27 }
 0x20a   : > { %v879_v21 = vpop.xlane.xlu1 %878  ;;  %v1060_v9 = vrot.slane %v1927_v2, %v1918_v55 }
 0x20b   : > { %v1032_v28 = vrot.slane %v879_v21, %v1918_v55 }
 0x20c   : > { %v1101_v47 = vsel %vm1077_vm5, %v1060_v9, %v1100_v33 }
 0x20d   : > { %v855_v0 = vpop.xlane.xlu0 %854  ;;  %v1095_v19 = vsel %vm1079_vm6, %v1032_v28, %v1094_v61 }
 0x20e   : > { %v834_v30 = vpop.xlane.xlu1 %833  ;;  %v1000_v20 = vrot.slane %v855_v0, %v1918_v55 }
 0x20f   : > { %v972_v26 = vrot.slane %v834_v30, %v1918_v55 }
 0x210   : > { %v1088_v15 = vsel %vm1079_vm6, %v1000_v20, %v1087_v43 }
 0x211   : > { %v1082_v48 = vsel %vm1081_vm7, %v972_v26, %v1080_v50  ;;  %v903_v3 = vpop.xlane.xlu0 %902 }
 0x212   : > { %1109 = vst.msk [vmem:[%s1963_s2] sm:$0xff] %vm1108_vm8, %v1082_v48  ;;  %v882_v53 = vpop.xlane.xlu1 %881  ;;  %v1064_v25 = vrot.slane %v903_v3, %v1918_v55 }
 0x213   : > { %v1036_v13 = vrot.slane %v882_v53, %v1918_v55 }
 0x214   : > { %v1102_v58 = vsel %vm1079_vm6, %v1064_v25, %v1101_v47 }
 0x215   : > { %v1096_v34 = vsel %vm1081_vm7, %v1036_v13, %v1095_v19  ;;  %v858_v23 = vpop.xlane.xlu0 %857 }
 0x216   : > { %1111 = vst.msk [vmem:[%s1963_s2 + $0x10] sm:$0xff] %vm1108_vm8, %v1096_v34  ;;  %v1004_v44 = vrot.slane %v858_v23, %v1918_v55 }
 0x218   : > { %v1089_v31 = vsel %vm1081_vm7, %v1004_v44, %v1088_v15 }
 0x219   : > { %1110 = vst.msk [vmem:[%s1963_s2 + $0x8] sm:$0xff] %vm1108_vm8, %v1089_v31  ;;  %v906_v40 = vpop.xlane.xlu0 %905 }
 0x21a   : > { %v1068_v46 = vrot.slane %v906_v40, %v1918_v55 }
 0x21c   : > { %v1103_v6 = vsel %vm1081_vm7, %v1068_v46, %v1102_v58 }
 0x21d   : > { %1112 = vst.msk [vmem:[%s1963_s2 + $0x18] sm:$0xff] %vm1108_vm8, %v1103_v6 }
 0x21e   : > { %1347 = shalt.err (!%p1344_p6)
}
 0x21f   : > { %s1348_s24 = scalar_lea.hbm %s2011_s12, 512  ;;  %s1352_s26 = scalar_lea.hbm %s2064_s1, 1024 }
 0x220   : > { %p1349_p7 = scmp.ne.s32.totalorder %s2011_s12, %s1348_s24  ;;  %p1353_p13 = scmp.lt.s32.totalorder %s2011_s12, %s2064_s1 }
 0x221   : > { %p1354_p2 = scmp.lt.s32.totalorder %s1352_s26, %s1348_s24 }
 0x222   : > { %p1350_p10 = pnand %p1349_p7, %p1493_p9 }
 0x223   : > { %p1355_p8 = por %p1354_p2, %p1353_p13 }
 0x224   : > { %p1351_p4 = pneg %p1350_p10 }
 0x226   : > { %p1356_p12 = pnand %p1355_p8, %p1351_p4 }
 0x228   : > { %1359 = shalt.err (!%p1356_p12)
}
 0x229   : > { %s1430_s29 = smov 128   ;;  %s1431_s30 = smov 8  }
 0x22a   : > { %1232 = dma.vmem_to_hbm [thread:$0]  (%p1493_p9), %s2002_s3, 512, %s2011_s12, %s1114_s13, %s1430_s29, %s1430_s29, %s1431_s30  }
 0x22b PF: > { %s1143_s2 = sand.u32 1, %s1394_s6   ;;  %p2076_p0 = scmp.ge.s32.totalorder %s1414_s11, 2 }
 0x22c   : > { %s1144_s4 = scalar_lea.sflag [#allocation4], %s1143_s2 }
 0x22d   : > { %p1239_p1 = pnand %p2076_p0, %p1500_p11 }
 0x22f   : > { %p1240_p3 = pneg %p1239_p1 }
 0x231   : > { %1389 = dma.done.wait (%p1240_p3), %s1144_s4, 512  }
 0x232   : > { %1391 = vsyncadd (%p1240_p3), %s1144_s4, 4294966784  ;;  %s17_s11 = sadd.s32 1, %s1414_s11   ;;  %s2077_s6 = smov %s1398_s7 }
 0x233   : > { %p14_p5 = scmp.ge.s32.totalorder %s17_s11, 4   ;;  %s2078_s7 = smov %s1402_s8 }
 0x234   : > { %s2079_s8 = smov %s1498_s20  ;;  %s2080_s9 = smov %s1410_s10 }
 0x235   : > { %s2081_s10 = smov %s2083_s14  ;;  %16 = sbr.rel (!%p14_p5) target bundleno = 6 (0x6), region = 69 }
 0x23a   :  { %1149 = vsyncpa [#allocation3], 1 }
 0x23b   :  { %1151 = vsyncpa [#allocation3 + $0x1], 1 }
 0x23c   :  { %1152 = vsyncpa [#allocation4], 1 }
 0x23d   :  { %1154 = vsyncpa [#allocation4 + $0x1], 1 }

// kernel: tpu_custom_call.1
= control target key start
LH: loop header
LB: loop body
LE: loop exit
PB: predicated region body
PF: predicated region fallthrough
CT: control target
= control target key end

     0   :  { %6 = vsyncpa [#allocation4], 0  ;;  %s940_s0 = inlined_call_operand.hbm [shape: f32[8,8,32], index: 0, kind: input, shape index: {}]   ;;  %s941_s1 = inlined_call_operand.hbm [shape: f32[8,8,8], index: 1, kind: output, shape index: {}]  }
   0x1   :  { %8 = vsyncpa [#allocation4 + $0x1], 0 }
   0x2   :  { %9 = vsyncpa [#allocation5], 0 }
   0x3   :  { %11 = vsyncpa [#allocation5 + $0x1], 0  ;;  %s778_s6 = smov 0   ;;  %s780_s7 = smov 0  }
   0x4   :  { %s782_s8 = smov 0   ;;  %s784_s9 = smov 0  }
   0x5   :  { %s786_s10 = smov 0   ;;  %s788_s11 = smov 0  }
   0x6 LB: > { %s566_s12 = sadd.s32 4294967295, %s759_s11   ;;  %s567_s13 = sadd.s32 4294967294, %s759_s11   ;;  %s759_s11 = sphi %s788_s11, %s17_s11   ;;  %s755_s10 = sphi %s786_s10, %s952_s10   ;;  %s751_s9 = sphi %s784_s9, %s951_s9   ;;  %s747_s8 = sphi %s782_s8, %s950_s8   ;;  %s743_s7 = sphi %s780_s7, %s949_s7   ;;  %s739_s6 = sphi %s778_s6, %s948_s6  }
   0x7   : > { %s29_s14 = sadd.s32 1, %s755_s10  ;;  %s38_s15 = sadd.s32 1, %s747_s8 }
   0x8   : > { %p31_p0 = scmp.ge.s32.totalorder %s29_s14, 2  ;;  %p45_p1 = scmp.ne.s32.totalorder %s747_s8, %s743_s7 }
   0x9   : > { %p46_p2 = scmp.eq.s32.totalorder %s759_s11, 0  ;;  %p51_p3 = scmp.ne.s32.totalorder %s743_s7, %s739_s6 }
   0xa   : > { %s954_s14 = smov (%p31_p0, %s29_s14), 0  ;;  %p52_p5 = scmp.eq.s32.totalorder %s566_s12, 0 }
   0xb   : > { %p819_p4 = por %p46_p2, %p45_p1  ;;  %s33_s17 = ssub.s32 %s755_s10, %s954_s14 }
   0xc   : > { %p77_p6 = scmp.eq.s32.totalorder %s566_s12, 1  ;;  %p36_p7 = scmp.eq.s32.totalorder %s33_s17, 0 }
   0xd   : > { %p825_p8 = por %p52_p5, %p51_p3  ;;  %p83_p10 = scmp.eq.s32.totalorder %s567_s13, 1 }
   0xe   : > { %p829_p9 = por %p77_p6, %p45_p1  ;;  %p595_p13 = scmp.lt.s32.totalorder %s759_s11, 2 }
   0xf   : > { %s834_s20 = scalar_select %p36_p7, %s747_s8, %s38_s15  }
  0x10   : > { %p836_p11 = por %p83_p10, %p51_p3  ;;  %s103_s22 = sand.u32 1, %s747_s8  }
  0x11   : > { %s570_s23 = sshll.u32 %s103_s22, 5  ;;  %s581_s24 = sshll.u32 %s755_s10, 9 }
  0x12   : > { %s114_s27 = scalar_lea.hbm %s940_s0, %s581_s24  ;;  %s107_s28 = scalar_lea.vmem [#allocation3], %s570_s23 }
  0x13   : > { %s115_s29 = sshll.u32 %s107_s28, 4  ;;  %p849_p0 = pnand %p595_p13, %p819_p4  ;;  %s116_s29 = int_to_ptr.vmem [resolvable:$true] %s115_s29 }
  0x14   : > { %p573_p1 = scmp.ge.s32.totalorder %s759_s11, 1  ;;  %s104_s2 = scalar_lea.sflag [#allocation4], %s103_s22 }
  0x15   : > { %p653_p2 = pneg %p849_p0  ;;  %s664_s3 = scalar_lea.vmem %s116_s29, 512 }
  0x16   : > { %p665_p3 = scmp.ne.s32.totalorder %s116_s29, %s664_s3  ;;  %s761_s4 = smov [#allocation3]  }
  0x17   : > { %s669_s5 = sshll.u32 %s761_s4, 4  ;;  %s670_s5 = int_to_ptr.vmem [resolvable:$false] %s669_s5 }
  0x18   : > { %p667_p5 = pnand %p665_p3, %p653_p2  ;;  %s671_s12 = scalar_lea.vmem %s670_s5, 1024 }
  0x19   : > { %p672_p7 = scmp.lt.s32.totalorder %s116_s29, %s670_s5  ;;  %p673_p10 = scmp.lt.s32.totalorder %s671_s12, %s664_s3 }
  0x1a   : > { %p668_p6 = pneg %p667_p5 }
  0x1b   : > { %p674_p12 = por %p673_p10, %p672_p7 }
  0x1d   : > { %p675_p4 = pnand %p674_p12, %p668_p6 }
  0x1f   : > { %678 = shalt.err (!%p675_p4)
}
  0x20   : > { %s762_s13 = smov 128   ;;  %s763_s15 = smov 8  }
  0x21   : > { %590 = dma.hbm_to_vmem [thread:$0]  (!%p849_p0), %s114_s27, 512, %s116_s29, %s104_s2, %s762_s13, %s762_s13, %s763_s15  }
  0x22   : > { %p123_p13 = scmp.lt.s32.totalorder %s759_s11, 3 }
  0x24   : > { %p124_p2 = pnand %p573_p1, %p123_p13 }
  0x25   : > { %s862_s16 = sand.u32 (!%p124_p2), 1, %s743_s7  }
  0x26   : > { %127 = sbr.rel (%p124_p2) target bundleno = 456 (0x1c8), region = 24  ;;  %s574_s17 = sshll.u32 (!%p124_p2), %s862_s16, 5 }
  0x27   : > { %s130_s22 = scalar_lea.sflag (!%p124_p2), [#allocation4], %s862_s16  ;;  %s133_s23 = scalar_lea.vmem (!%p124_p2), [#allocation3], %s574_s17 }
  0x2b   : > { %730 = dma.done.wait (%p825_p8), %s130_s22, 512  }
  0x2c   : > { %732 = vsyncadd (%p825_p8), %s130_s22, 4294966784  ;;  %v154_v0 = vld [vmem:[%s133_s23] sm:$0xff]  ;;  %v156_v1 = vld [vmem:[%s133_s23 + $0x10] sm:$0xff]  ;;  %s764_s24 = smov 112   ;;  %vm306_vm0 = vcmask 64512   ;;  %s151_s18 = scalar_lea.vmem [#allocation6], %s574_s17 }
  0x2d   : > { %162 = vrot.lane.b32.xlu0 %v154_v0, %s764_s24  ;;  %166 = vrot.lane.b32.xlu1 %v156_v1, %s764_s24  ;;  %v155_v2 = vld [vmem:[%s133_s23 + $0x8] sm:$0xff]  ;;  %v157_v3 = vld [vmem:[%s133_s23 + $0x18] sm:$0xff]  ;;  %s481_s25 = sshll.u32 %s151_s18, 4  ;;  %s582_s26 = sshll.u32 %s751_s9, 9  ;;  %s886_s25 = int_to_ptr.vmem [resolvable:$true] %s481_s25 }
  0x2e   : > { %s891_s29 = scalar_lea.hbm %s941_s1, %s582_s26  ;;  %s467_s30 = scalar_lea.sflag [#allocation5], %s862_s16 }
  0x2f   : > { %s679_s2 = scalar_lea.vmem %s886_s25, 512  ;;  %s765_s9 = smov [#allocation6]  }
  0x30   : > { %p680_p8 = scmp.ne.s32.totalorder %s886_s25, %s679_s2  ;;  %s683_s3 = sshll.u32 %s765_s9, 4  ;;  %s684_s3 = int_to_ptr.vmem [resolvable:$false] %s683_s3 }
  0x31   : > { %164 = vrot.lane.b32.xlu0 %v155_v2, %s764_s24  ;;  %168 = vrot.lane.b32.xlu1 %v157_v3, %s764_s24  ;;  %s685_s4 = scalar_lea.vmem %s684_s3, 1024  ;;  %p686_p1 = scmp.lt.s32.totalorder %s886_s25, %s684_s3 }
  0x32   : > { %p681_p12 = pnand %p680_p8, %p829_p9  ;;  %p687_p3 = scmp.lt.s32.totalorder %s685_s4, %s679_s2 }
  0x34   : > { %p682_p0 = pneg %p681_p12  ;;  %p688_p5 = por %p687_p3, %p686_p1 }
  0x36   : > { %p689_p6 = pnand %p688_p5, %p682_p0 }
  0x9f   : > { %v163_v4 = vpop.permute.xlu0 %162  ;;  %v167_v6 = vpop.permute.xlu1 %166 }
  0xa0   : > { %v174_v5 = vmax.f32 %v154_v0, %v163_v4  ;;  %v176_v7 = vmax.f32 %v156_v1, %v167_v6 }
  0xa2   : > { %178 = vxpose.xlu0.b32.start.end [1/1] (short) (narrow) %v174_v5, 16 }
  0xa3   : > { %v165_v8 = vpop.permute.xlu0 %164  ;;  %v169_v10 = vpop.permute.xlu1 %168 }
  0xa4   : > { %v175_v9 = vmax.f32 %v155_v2, %v165_v8  ;;  %v177_v11 = vmax.f32 %v157_v3, %v169_v10 }
  0xa6   : > { %210 = vxpose.xlu1.b32.start.end [1/1] (short) (narrow) %v175_v9, 16 }
  0xa7   : > { %242 = vxpose.xlu0.b32.start.end [1/1] (short) (narrow) %v176_v7, 16 }
  0xac   : > { %274 = vxpose.xlu0.b32.start.end [1/1] (short) (narrow) %v177_v11, 16 }
 0x11e   : > { %v194_v12 = vpop.trf.xlu0 }
 0x11f   : > { %307 = vst.msk [vmem:[#allocation2] sm:$0xff] %vm306_vm0, %v194_v12 }
 0x122   : > { %v195_v13 = vpop.trf.xlu0  ;;  %v226_v14 = vpop.trf.xlu1 }
 0x123   : > { %308 = vst.msk [vmem:[#allocation2 + $0x8] sm:$0xff] %vm306_vm0, %v195_v13  ;;  %309 = vst.msk [vmem:[#allocation2 + $0x10] sm:$0xff] %vm306_vm0, %v226_v14 }
 0x126   : > { %v258_v15 = vpop.trf.xlu0  ;;  %v227_v16 = vpop.trf.xlu1 }
 0x127   : > { %311 = vst.msk [vmem:[#allocation2 + $0x20] sm:$0xff] %vm306_vm0, %v258_v15  ;;  %310 = vst.msk [vmem:[#allocation2 + $0x18] sm:$0xff] %vm306_vm0, %v227_v16 }
 0x12a   : > { %v259_v17 = vpop.trf.xlu0  ;;  %v315_v18 = vld [vmem:[#allocation2] ss:$2 sm:$0xff]  ;;  %v323_v19 = vld [vmem:[#allocation2 + $0x1] ss:$2 sm:$0xff] }
 0x12b   : > { %312 = vst.msk [vmem:[#allocation2 + $0x28] sm:$0xff] %vm306_vm0, %v259_v17  ;;  %v330_v20 = vmax.f32 %v315_v18, %v323_v19 }
 0x12d   : > { %334 = vxpose.xlu0.b32.start.end [1/1] (short) (narrow) %v330_v20, 8 }
 0x12e   : > { %v290_v21 = vpop.trf.xlu0  ;;  %v317_v22 = vld [vmem:[#allocation2 + $0x10] ss:$2 sm:$0xff]  ;;  %v325_v23 = vld [vmem:[#allocation2 + $0x11] ss:$2 sm:$0xff] }
 0x12f   : > { %313 = vst.msk [vmem:[#allocation2 + $0x30] sm:$0xff] %vm306_vm0, %v290_v21  ;;  %v331_v24 = vmax.f32 %v317_v22, %v325_v23 }
 0x131   : > { %366 = vxpose.xlu1.b32.start.end [1/1] (short) (narrow) %v331_v24, 8 }
 0x132   : > { %v291_v25 = vpop.trf.xlu0  ;;  %v319_v26 = vld [vmem:[#allocation2 + $0x20] ss:$2 sm:$0xff]  ;;  %v327_v27 = vld [vmem:[#allocation2 + $0x21] ss:$2 sm:$0xff] }
 0x133   : > { %314 = vst.msk [vmem:[#allocation2 + $0x38] sm:$0xff] %vm306_vm0, %v291_v25  ;;  %v332_v28 = vmax.f32 %v319_v26, %v327_v27 }
 0x135   : > { %398 = vxpose.xlu0.b32.start.end [1/1] (short) (narrow) %v332_v28, 8 }
 0x13a   : > { %v321_v29 = vld [vmem:[#allocation2 + $0x30] ss:$2 sm:$0xff]  ;;  %v329_v30 = vld [vmem:[#allocation2 + $0x31] ss:$2 sm:$0xff] }
 0x13b   : > { %v333_v31 = vmax.f32 %v321_v29, %v329_v30 }
 0x13d   : > { %430 = vxpose.xlu1.b32.start.end [1/1] (short) (narrow) %v333_v31, 8 }
 0x1a9   : > { %v350_v32 = vpop.trf.xlu0 }
 0x1aa   : > { %462 = vst.msk [vmem:[%s151_s18] sm:$0xff] %vm306_vm0, %v350_v32 }
 0x1ad   : > { %v382_v33 = vpop.trf.xlu1 }
 0x1ae   : > { %463 = vst.msk [vmem:[%s151_s18 + $0x8] sm:$0xff] %vm306_vm0, %v382_v33 }
 0x1b1   : > { %v414_v34 = vpop.trf.xlu0 }
 0x1b2   : > { %464 = vst.msk [vmem:[%s151_s18 + $0x10] sm:$0xff] %vm306_vm0, %v414_v34 }
 0x1b9   : > { %v446_v35 = vpop.trf.xlu1 }
 0x1ba   : > { %465 = vst.msk [vmem:[%s151_s18 + $0x18] sm:$0xff] %vm306_vm0, %v446_v35 }
 0x1bb   : > { %692 = shalt.err (!%p689_p6)
}
 0x1bc   : > { %s693_s5 = scalar_lea.hbm %s891_s29, 512  ;;  %s697_s15 = scalar_lea.hbm %s941_s1, 1024 }
 0x1bd   : > { %p694_p7 = scmp.ne.s32.totalorder %s891_s29, %s693_s5  ;;  %p698_p13 = scmp.lt.s32.totalorder %s891_s29, %s941_s1 }
 0x1be   : > { %p699_p2 = scmp.lt.s32.totalorder %s697_s15, %s693_s5 }
 0x1bf   : > { %p695_p10 = pnand %p694_p7, %p829_p9 }
 0x1c0   : > { %p700_p8 = por %p699_p2, %p698_p13 }
 0x1c1   : > { %p696_p4 = pneg %p695_p10 }
 0x1c3   : > { %p701_p12 = pnand %p700_p8, %p696_p4 }
 0x1c5   : > { %704 = shalt.err (!%p701_p12)
}
 0x1c6   : > { %s766_s23 = smov 128   ;;  %s767_s24 = smov 8  }
 0x1c7   : > { %585 = dma.vmem_to_hbm [thread:$0]  (%p829_p9), %s886_s25, 512, %s891_s29, %s467_s30, %s766_s23, %s766_s23, %s767_s24  }
 0x1c8 PF: > { %s496_s18 = sand.u32 1, %s739_s6   ;;  %p947_p0 = scmp.ge.s32.totalorder %s759_s11, 2 }
 0x1c9   : > { %s497_s26 = scalar_lea.sflag [#allocation5], %s496_s18 }
 0x1ca   : > { %p592_p1 = pnand %p947_p0, %p836_p11 }
 0x1cc   : > { %p593_p3 = pneg %p592_p1 }
 0x1ce   : > { %734 = dma.done.wait (%p593_p3), %s497_s26, 512  }
 0x1cf   : > { %736 = vsyncadd (%p593_p3), %s497_s26, 4294966784  ;;  %s17_s11 = sadd.s32 1, %s759_s11   ;;  %s948_s6 = smov %s743_s7 }
 0x1d0   : > { %p14_p5 = scmp.ge.s32.totalorder %s17_s11, 4   ;;  %s949_s7 = smov %s747_s8 }
 0x1d1   : > { %s950_s8 = smov %s834_s20  ;;  %s951_s9 = smov %s755_s10 }
 0x1d2   : > { %s952_s10 = smov %s954_s14  ;;  %16 = sbr.rel (!%p14_p5) target bundleno = 6 (0x6), region = 76 }
 0x1d7   :  { %502 = vsyncpa [#allocation4], 1 }
 0x1d8   :  { %504 = vsyncpa [#allocation4 + $0x1], 1 }
 0x1d9   :  { %505 = vsyncpa [#allocation5], 1 }
 0x1da   :  { %507 = vsyncpa [#allocation5 + $0x1], 1 }

</bundles_post_ra>
